<compile_context>
chip_gen: v7x
topology: tpu7x:2x2x1
jax: 0.10.0
libtpu: 0.0.40
codegen_flags: <defaults>
</compile_context>

<pallas_src>
import functools

import jax
import jax.numpy as jnp
from jax import lax
from jax.experimental import pallas as pl
from jax.experimental.pallas import tpu as pltpu

# ----------------------------- config (synthetic) -----------------------------
VOCAB_SIZE = 16
EMBED_DIM = 32
HIDDEN_SIZE = 32
OUTPUT_CLASS = 4
BATCH = 2
SEQ = 8
OUT_PAD = 128  # lane-dense padded width for the classifier output


# ------------------------------- Pallas kernel --------------------------------
def lstm_classify_kernel(x_ref, w_ref, b_ref, wout_ref, bout_ref, out_ref, *,
                         seq_len, hidden_size):
    """Entire LSTM + classifier in one kernel invocation.

    x_ref    : (T, B, E)     time-major embedded sequence (all of it in VMEM)
    w_ref    : (E+H, 4H)     stacked [W_ih^T ; W_hh^T] (PyTorch gate order i,f,g,o)
    b_ref    : (1, 4H)       b_ih + b_hh
    wout_ref : (H, OUT_PAD)  final linear weight^T, zero-padded to 128 lanes
    bout_ref : (1, OUT_PAD)  final linear bias, zero-padded to 128 lanes
    out_ref  : (B, OUT_PAD)  lane-dense logits slab (only [:, :C] meaningful)
    """
    H = hidden_size
    B = x_ref.shape[1]

    # Hoist weights/bias out of the timestep loop (single VMEM load each).
    w = w_ref[...]          # (E+H, 4H)
    b = b_ref[...]          # (1, 4H)

    def step(t, carry):
        h, c = carry                                        # (B, H) each, in vregs
        x_t = x_ref[t]                                      # (B, E)
        xh = jnp.concatenate([x_t, h], axis=1)              # (B, E+H)
        gates = jnp.dot(xh, w,
                        preferred_element_type=jnp.float32) + b   # (B, 4H)
        # Two full-width transcendental passes over the whole gates vreg,
        # then narrow slices of the already-activated values.
        sig = jax.nn.sigmoid(gates)
        th = jnp.tanh(gates)
        i = sig[:, 0 * H:1 * H]
        f = sig[:, 1 * H:2 * H]
        g = th[:, 2 * H:3 * H]
        o = sig[:, 3 * H:4 * H]
        c_new = f * c + i * g
        h_new = o * jnp.tanh(c_new)
        return h_new, c_new

    h0 = jnp.zeros((B, H), jnp.float32)
    c0 = jnp.zeros((B, H), jnp.float32)
    h_last, _ = lax.fori_loop(0, seq_len, step, (h0, c0), unroll=True)

    logits = jnp.dot(h_last, wout_ref[...],
                     preferred_element_type=jnp.float32) + bout_ref[...]
    out_ref[...] = logits.astype(out_ref.dtype)


# --------------------------------- wrapper -------------------------------------
def lstm_classify_pallas(embedded, w_ih, w_hh, b_ih, b_hh, w_out, b_out):
    """embedded: (B, T, E) float32 (already gathered). Returns logits (B, C)."""
    B, T, E = embedded.shape
    H = w_hh.shape[1]
    C = w_out.shape[0]

    # Plain-JAX prep (done once, outside the kernel).
    x_tbe = jnp.transpose(embedded, (1, 0, 2))                    # (T, B, E)
    w = jnp.concatenate([w_ih.T, w_hh.T], axis=0)                 # (E+H, 4H)
    b = (b_ih + b_hh).reshape(1, 4 * H)                           # (1, 4H)
    w_out_pad = jnp.zeros((H, OUT_PAD), jnp.float32).at[:, :C].set(w_out.T)
    b_out_pad = jnp.zeros((1, OUT_PAD), jnp.float32).at[0, :C].set(b_out)

    kernel = functools.partial(lstm_classify_kernel, seq_len=T, hidden_size=H)

    logits_pad = pl.pallas_call(
        kernel,
        out_shape=jax.ShapeDtypeStruct((B, OUT_PAD), jnp.float32),
        grid=(1,),
        in_specs=[
            pl.BlockSpec((T, B, E), lambda i: (0, 0, 0)),         # full sequence
            pl.BlockSpec((E + H, 4 * H), lambda i: (0, 0)),       # stacked weights
            pl.BlockSpec((1, 4 * H), lambda i: (0, 0)),           # folded bias
            pl.BlockSpec((H, OUT_PAD), lambda i: (0, 0)),         # padded W_out^T
            pl.BlockSpec((1, OUT_PAD), lambda i: (0, 0)),         # padded b_out
        ],
        out_specs=pl.BlockSpec((B, OUT_PAD), lambda i: (0, 0)),
        compiler_params=pltpu.CompilerParams(
            dimension_semantics=("arbitrary",)),
    )(x_tbe, w, b, w_out_pad, b_out_pad)

    return logits_pad[:, :C]


# ------------------------------ parameter init --------------------------------
def init_params(key):
    k_embed, k_wih, k_whh, k_bih, k_bhh, k_wout, k_bout = jax.random.split(key, 7)
    embed = jax.random.normal(k_embed, (VOCAB_SIZE, EMBED_DIM), jnp.float32) * 0.1
    embed = embed.at[0].set(0.0)  # padding_idx=0

    # PyTorch nn.LSTM params: weight_ih_l0 (4H, E), weight_hh_l0 (4H, H), biases (4H,)
    w_ih = jax.random.normal(k_wih, (4 * HIDDEN_SIZE, EMBED_DIM), jnp.float32) * 0.1
    w_hh = jax.random.normal(k_whh, (4 * HIDDEN_SIZE, HIDDEN_SIZE), jnp.float32) * 0.1
    b_ih = jax.random.normal(k_bih, (4 * HIDDEN_SIZE,), jnp.float32) * 0.1
    b_hh = jax.random.normal(k_bhh, (4 * HIDDEN_SIZE,), jnp.float32) * 0.1

    # nn.Linear(hidden, classes): weight (C, H), bias (C,)
    w_out = jax.random.normal(k_wout, (OUTPUT_CLASS, HIDDEN_SIZE), jnp.float32) * 0.1
    b_out = jax.random.normal(k_bout, (OUTPUT_CLASS,), jnp.float32) * 0.1
    return embed, w_ih, w_hh, b_ih, b_hh, w_out, b_out


# ---------------------------- pure-JAX reference -------------------------------
def reference_forward(tokens, embed, w_ih, w_hh, b_ih, b_hh, w_out, b_out):
    x = jnp.take(embed, tokens, axis=0)  # (B, T, E)
    B = x.shape[0]
    H = HIDDEN_SIZE
    h = jnp.zeros((B, H), jnp.float32)
    c = jnp.zeros((B, H), jnp.float32)

    def step(carry, x_t):
        h, c = carry
        gates = x_t @ w_ih.T + b_ih + h @ w_hh.T + b_hh
        i = jax.nn.sigmoid(gates[:, 0 * H:1 * H])
        f = jax.nn.sigmoid(gates[:, 1 * H:2 * H])
        g = jnp.tanh(gates[:, 2 * H:3 * H])
        o = jax.nn.sigmoid(gates[:, 3 * H:4 * H])
        c = f * c + i * g
        h = o * jnp.tanh(c)
        return (h, c), None

    (h, c), _ = jax.lax.scan(step, (h, c), jnp.transpose(x, (1, 0, 2)))
    return h @ w_out.T + b_out


# ------------------------------------ main -------------------------------------
if __name__ == "__main__":
    key = jax.random.PRNGKey(0)
    k_params, k_tokens = jax.random.split(key)
    embed, w_ih, w_hh, b_ih, b_hh, w_out, b_out = init_params(k_params)

    tokens = jax.random.randint(k_tokens, (BATCH, SEQ), 0, VOCAB_SIZE, jnp.int32)

    # TODO(synk): embedding gather kept as a plain-XLA jnp.take in the wrapper
    # (data-dependent row gather; at this size fusing it in-kernel is not worth it).
    embedded = jnp.take(embed, tokens, axis=0)          # (B, T, E)

    logits = lstm_classify_pallas(embedded, w_ih, w_hh, b_ih, b_hh, w_out, b_out)
    logits = jax.block_until_ready(logits)

    ref = reference_forward(tokens, embed, w_ih, w_hh, b_ih, b_hh, w_out, b_out)
    assert logits.shape == (BATCH, OUTPUT_CLASS), logits.shape
    assert jnp.allclose(logits, ref, atol=1e-4, rtol=1e-4), (logits, ref)

    print("KERNEL_OK")
</pallas_src>

<mosaic_0001>
module attributes {stable_mosaic.version = 11 : i64} {
  func.func @lstm_classify_kernel(%arg0: i32, %arg1: memref<8x2x32xf32, #tpu.memory_space<vmem>>, %arg2: memref<64x128xf32, #tpu.memory_space<vmem>>, %arg3: memref<1x128xf32, #tpu.memory_space<vmem>>, %arg4: memref<32x128xf32, #tpu.memory_space<vmem>>, %arg5: memref<1x128xf32, #tpu.memory_space<vmem>>, %arg6: memref<2x128xf32, #tpu.memory_space<vmem>>) attributes {dimension_semantics = [#tpu.dimension_semantics<arbitrary>], iteration_bounds = array<i64: 1>, scalar_prefetch = 0 : i64, scratch_operands = 0 : i64, tpu.core_type = #tpu.core_type<tc>, window_params = [{pipeline_mode = #tpu.pipeline_mode<synchronous>, transform_indices = @transform_0, window_bounds = array<i64: 8, 2, 32>}, {pipeline_mode = #tpu.pipeline_mode<synchronous>, transform_indices = @transform_1, window_bounds = array<i64: 64, 128>}, {pipeline_mode = #tpu.pipeline_mode<synchronous>, transform_indices = @transform_2, window_bounds = array<i64: 1, 128>}, {pipeline_mode = #tpu.pipeline_mode<synchronous>, transform_indices = @transform_3, window_bounds = array<i64: 32, 128>}, {pipeline_mode = #tpu.pipeline_mode<synchronous>, transform_indices = @transform_4, window_bounds = array<i64: 1, 128>}, {pipeline_mode = #tpu.pipeline_mode<synchronous>, transform_indices = @transform_5, window_bounds = array<i64: 2, 128>}]} {
    %c0 = arith.constant 0 : index
    %c0_0 = arith.constant 0 : index
    %0 = vector.load %arg2[%c0, %c0_0] : memref<64x128xf32, #tpu.memory_space<vmem>>, vector<64x128xf32>
    %c0_1 = arith.constant 0 : index
    %c0_2 = arith.constant 0 : index
    %1 = vector.load %arg3[%c0_1, %c0_2] : memref<1x128xf32, #tpu.memory_space<vmem>>, vector<1x128xf32>
    %cst = arith.constant 0.000000e+00 : f32
    %2 = vector.broadcast %cst : f32 to vector<2x32xf32>
    %cst_3 = arith.constant 0.000000e+00 : f32
    %3 = vector.broadcast %cst_3 : f32 to vector<2x32xf32>
    %c0_i32 = arith.constant 0 : i32
    %4 = arith.index_cast %c0_i32 : i32 to index
    %c0_4 = arith.constant 0 : index
    %c0_5 = arith.constant 0 : index
    %5 = vector.load %arg1[%4, %c0_4, %c0_5] : memref<8x2x32xf32, #tpu.memory_space<vmem>>, vector<1x2x32xf32>
    %6 = vector.shape_cast %5 : vector<1x2x32xf32> to vector<2x32xf32>
    %7 = tpu.concatenate %6, %2 in 1 : vector<2x32xf32>, vector<2x32xf32> -> vector<2x64xf32>
    %cst_6 = arith.constant dense<0.000000e+00> : vector<2x128xf32>
    %8 = tpu.matmul %7, %0, %cst_6 {dimension_numbers = #tpu.dot_dimension_numbers<[1], [0], [0], [1], [0, 0, 1, 1], [], []>} : vector<2x64xf32>, vector<64x128xf32>, vector<2x128xf32> -> vector<2x128xf32>
    %9 = vector.broadcast %1 : vector<1x128xf32> to vector<2x128xf32>
    %10 = arith.addf %8, %9 : vector<2x128xf32>
    %11 = arith.negf %10 : vector<2x128xf32>
    %12 = math.exp %11 : vector<2x128xf32>
    %cst_7 = arith.constant 1.000000e+00 : f32
    %13 = vector.broadcast %cst_7 : f32 to vector<2x128xf32>
    %14 = arith.addf %13, %12 : vector<2x128xf32>
    %15 = arith.divf %13, %14 : vector<2x128xf32>
    %16 = math.tanh %10 : vector<2x128xf32>
    %17 = vector.extract_strided_slice %15 {offsets = [0, 0], sizes = [2, 32], strides = [1, 1]} : vector<2x128xf32> to vector<2x32xf32>
    %18 = vector.extract_strided_slice %15 {offsets = [0, 32], sizes = [2, 32], strides = [1, 1]} : vector<2x128xf32> to vector<2x32xf32>
    %19 = vector.extract_strided_slice %16 {offsets = [0, 64], sizes = [2, 32], strides = [1, 1]} : vector<2x128xf32> to vector<2x32xf32>
    %20 = vector.extract_strided_slice %15 {offsets = [0, 96], sizes = [2, 32], strides = [1, 1]} : vector<2x128xf32> to vector<2x32xf32>
    %21 = arith.mulf %18, %3 : vector<2x32xf32>
    %22 = arith.mulf %17, %19 : vector<2x32xf32>
    %23 = arith.addf %21, %22 : vector<2x32xf32>
    %24 = math.tanh %23 : vector<2x32xf32>
    %25 = arith.mulf %20, %24 : vector<2x32xf32>
    %c1_i32 = arith.constant 1 : i32
    %26 = arith.index_cast %c1_i32 : i32 to index
    %c0_8 = arith.constant 0 : index
    %c0_9 = arith.constant 0 : index
    %27 = vector.load %arg1[%26, %c0_8, %c0_9] : memref<8x2x32xf32, #tpu.memory_space<vmem>>, vector<1x2x32xf32>
    %28 = vector.shape_cast %27 : vector<1x2x32xf32> to vector<2x32xf32>
    %29 = tpu.concatenate %28, %25 in 1 : vector<2x32xf32>, vector<2x32xf32> -> vector<2x64xf32>
    %cst_10 = arith.constant dense<0.000000e+00> : vector<2x128xf32>
    %30 = tpu.matmul %29, %0, %cst_10 {dimension_numbers = #tpu.dot_dimension_numbers<[1], [0], [0], [1], [0, 0, 1, 1], [], []>} : vector<2x64xf32>, vector<64x128xf32>, vector<2x128xf32> -> vector<2x128xf32>
    %31 = vector.broadcast %1 : vector<1x128xf32> to vector<2x128xf32>
    %32 = arith.addf %30, %31 : vector<2x128xf32>
    %33 = arith.negf %32 : vector<2x128xf32>
    %34 = math.exp %33 : vector<2x128xf32>
    %cst_11 = arith.constant 1.000000e+00 : f32
    %35 = vector.broadcast %cst_11 : f32 to vector<2x128xf32>
    %36 = arith.addf %35, %34 : vector<2x128xf32>
    %37 = arith.divf %35, %36 : vector<2x128xf32>
    %38 = math.tanh %32 : vector<2x128xf32>
    %39 = vector.extract_strided_slice %37 {offsets = [0, 0], sizes = [2, 32], strides = [1, 1]} : vector<2x128xf32> to vector<2x32xf32>
    %40 = vector.extract_strided_slice %37 {offsets = [0, 32], sizes = [2, 32], strides = [1, 1]} : vector<2x128xf32> to vector<2x32xf32>
    %41 = vector.extract_strided_slice %38 {offsets = [0, 64], sizes = [2, 32], strides = [1, 1]} : vector<2x128xf32> to vector<2x32xf32>
    %42 = vector.extract_strided_slice %37 {offsets = [0, 96], sizes = [2, 32], strides = [1, 1]} : vector<2x128xf32> to vector<2x32xf32>
    %43 = arith.mulf %40, %23 : vector<2x32xf32>
    %44 = arith.mulf %39, %41 : vector<2x32xf32>
    %45 = arith.addf %43, %44 : vector<2x32xf32>
    %46 = math.tanh %45 : vector<2x32xf32>
    %47 = arith.mulf %42, %46 : vector<2x32xf32>
    %c2_i32 = arith.constant 2 : i32
    %48 = arith.index_cast %c2_i32 : i32 to index
    %c0_12 = arith.constant 0 : index
    %c0_13 = arith.constant 0 : index
    %49 = vector.load %arg1[%48, %c0_12, %c0_13] : memref<8x2x32xf32, #tpu.memory_space<vmem>>, vector<1x2x32xf32>
    %50 = vector.shape_cast %49 : vector<1x2x32xf32> to vector<2x32xf32>
    %51 = tpu.concatenate %50, %47 in 1 : vector<2x32xf32>, vector<2x32xf32> -> vector<2x64xf32>
    %cst_14 = arith.constant dense<0.000000e+00> : vector<2x128xf32>
    %52 = tpu.matmul %51, %0, %cst_14 {dimension_numbers = #tpu.dot_dimension_numbers<[1], [0], [0], [1], [0, 0, 1, 1], [], []>} : vector<2x64xf32>, vector<64x128xf32>, vector<2x128xf32> -> vector<2x128xf32>
    %53 = vector.broadcast %1 : vector<1x128xf32> to vector<2x128xf32>
    %54 = arith.addf %52, %53 : vector<2x128xf32>
    %55 = arith.negf %54 : vector<2x128xf32>
    %56 = math.exp %55 : vector<2x128xf32>
    %cst_15 = arith.constant 1.000000e+00 : f32
    %57 = vector.broadcast %cst_15 : f32 to vector<2x128xf32>
    %58 = arith.addf %57, %56 : vector<2x128xf32>
    %59 = arith.divf %57, %58 : vector<2x128xf32>
    %60 = math.tanh %54 : vector<2x128xf32>
    %61 = vector.extract_strided_slice %59 {offsets = [0, 0], sizes = [2, 32], strides = [1, 1]} : vector<2x128xf32> to vector<2x32xf32>
    %62 = vector.extract_strided_slice %59 {offsets = [0, 32], sizes = [2, 32], strides = [1, 1]} : vector<2x128xf32> to vector<2x32xf32>
    %63 = vector.extract_strided_slice %60 {offsets = [0, 64], sizes = [2, 32], strides = [1, 1]} : vector<2x128xf32> to vector<2x32xf32>
    %64 = vector.extract_strided_slice %59 {offsets = [0, 96], sizes = [2, 32], strides = [1, 1]} : vector<2x128xf32> to vector<2x32xf32>
    %65 = arith.mulf %62, %45 : vector<2x32xf32>
    %66 = arith.mulf %61, %63 : vector<2x32xf32>
    %67 = arith.addf %65, %66 : vector<2x32xf32>
    %68 = math.tanh %67 : vector<2x32xf32>
    %69 = arith.mulf %64, %68 : vector<2x32xf32>
    %c3_i32 = arith.constant 3 : i32
    %70 = arith.index_cast %c3_i32 : i32 to index
    %c0_16 = arith.constant 0 : index
    %c0_17 = arith.constant 0 : index
    %71 = vector.load %arg1[%70, %c0_16, %c0_17] : memref<8x2x32xf32, #tpu.memory_space<vmem>>, vector<1x2x32xf32>
    %72 = vector.shape_cast %71 : vector<1x2x32xf32> to vector<2x32xf32>
    %73 = tpu.concatenate %72, %69 in 1 : vector<2x32xf32>, vector<2x32xf32> -> vector<2x64xf32>
    %cst_18 = arith.constant dense<0.000000e+00> : vector<2x128xf32>
    %74 = tpu.matmul %73, %0, %cst_18 {dimension_numbers = #tpu.dot_dimension_numbers<[1], [0], [0], [1], [0, 0, 1, 1], [], []>} : vector<2x64xf32>, vector<64x128xf32>, vector<2x128xf32> -> vector<2x128xf32>
    %75 = vector.broadcast %1 : vector<1x128xf32> to vector<2x128xf32>
    %76 = arith.addf %74, %75 : vector<2x128xf32>
    %77 = arith.negf %76 : vector<2x128xf32>
    %78 = math.exp %77 : vector<2x128xf32>
    %cst_19 = arith.constant 1.000000e+00 : f32
    %79 = vector.broadcast %cst_19 : f32 to vector<2x128xf32>
    %80 = arith.addf %79, %78 : vector<2x128xf32>
    %81 = arith.divf %79, %80 : vector<2x128xf32>
    %82 = math.tanh %76 : vector<2x128xf32>
    %83 = vector.extract_strided_slice %81 {offsets = [0, 0], sizes = [2, 32], strides = [1, 1]} : vector<2x128xf32> to vector<2x32xf32>
    %84 = vector.extract_strided_slice %81 {offsets = [0, 32], sizes = [2, 32], strides = [1, 1]} : vector<2x128xf32> to vector<2x32xf32>
    %85 = vector.extract_strided_slice %82 {offsets = [0, 64], sizes = [2, 32], strides = [1, 1]} : vector<2x128xf32> to vector<2x32xf32>
    %86 = vector.extract_strided_slice %81 {offsets = [0, 96], sizes = [2, 32], strides = [1, 1]} : vector<2x128xf32> to vector<2x32xf32>
    %87 = arith.mulf %84, %67 : vector<2x32xf32>
    %88 = arith.mulf %83, %85 : vector<2x32xf32>
    %89 = arith.addf %87, %88 : vector<2x32xf32>
    %90 = math.tanh %89 : vector<2x32xf32>
    %91 = arith.mulf %86, %90 : vector<2x32xf32>
    %c4_i32 = arith.constant 4 : i32
    %92 = arith.index_cast %c4_i32 : i32 to index
    %c0_20 = arith.constant 0 : index
    %c0_21 = arith.constant 0 : index
    %93 = vector.load %arg1[%92, %c0_20, %c0_21] : memref<8x2x32xf32, #tpu.memory_space<vmem>>, vector<1x2x32xf32>
    %94 = vector.shape_cast %93 : vector<1x2x32xf32> to vector<2x32xf32>
    %95 = tpu.concatenate %94, %91 in 1 : vector<2x32xf32>, vector<2x32xf32> -> vector<2x64xf32>
    %cst_22 = arith.constant dense<0.000000e+00> : vector<2x128xf32>
    %96 = tpu.matmul %95, %0, %cst_22 {dimension_numbers = #tpu.dot_dimension_numbers<[1], [0], [0], [1], [0, 0, 1, 1], [], []>} : vector<2x64xf32>, vector<64x128xf32>, vector<2x128xf32> -> vector<2x128xf32>
    %97 = vector.broadcast %1 : vector<1x128xf32> to vector<2x128xf32>
    %98 = arith.addf %96, %97 : vector<2x128xf32>
    %99 = arith.negf %98 : vector<2x128xf32>
    %100 = math.exp %99 : vector<2x128xf32>
    %cst_23 = arith.constant 1.000000e+00 : f32
    %101 = vector.broadcast %cst_23 : f32 to vector<2x128xf32>
    %102 = arith.addf %101, %100 : vector<2x128xf32>
    %103 = arith.divf %101, %102 : vector<2x128xf32>
    %104 = math.tanh %98 : vector<2x128xf32>
    %105 = vector.extract_strided_slice %103 {offsets = [0, 0], sizes = [2, 32], strides = [1, 1]} : vector<2x128xf32> to vector<2x32xf32>
    %106 = vector.extract_strided_slice %103 {offsets = [0, 32], sizes = [2, 32], strides = [1, 1]} : vector<2x128xf32> to vector<2x32xf32>
    %107 = vector.extract_strided_slice %104 {offsets = [0, 64], sizes = [2, 32], strides = [1, 1]} : vector<2x128xf32> to vector<2x32xf32>
    %108 = vector.extract_strided_slice %103 {offsets = [0, 96], sizes = [2, 32], strides = [1, 1]} : vector<2x128xf32> to vector<2x32xf32>
    %109 = arith.mulf %106, %89 : vector<2x32xf32>
    %110 = arith.mulf %105, %107 : vector<2x32xf32>
    %111 = arith.addf %109, %110 : vector<2x32xf32>
    %112 = math.tanh %111 : vector<2x32xf32>
    %113 = arith.mulf %108, %112 : vector<2x32xf32>
    %c5_i32 = arith.constant 5 : i32
    %114 = arith.index_cast %c5_i32 : i32 to index
    %c0_24 = arith.constant 0 : index
    %c0_25 = arith.constant 0 : index
    %115 = vector.load %arg1[%114, %c0_24, %c0_25] : memref<8x2x32xf32, #tpu.memory_space<vmem>>, vector<1x2x32xf32>
    %116 = vector.shape_cast %115 : vector<1x2x32xf32> to vector<2x32xf32>
    %117 = tpu.concatenate %116, %113 in 1 : vector<2x32xf32>, vector<2x32xf32> -> vector<2x64xf32>
    %cst_26 = arith.constant dense<0.000000e+00> : vector<2x128xf32>
    %118 = tpu.matmul %117, %0, %cst_26 {dimension_numbers = #tpu.dot_dimension_numbers<[1], [0], [0], [1], [0, 0, 1, 1], [], []>} : vector<2x64xf32>, vector<64x128xf32>, vector<2x128xf32> -> vector<2x128xf32>
    %119 = vector.broadcast %1 : vector<1x128xf32> to vector<2x128xf32>
    %120 = arith.addf %118, %119 : vector<2x128xf32>
    %121 = arith.negf %120 : vector<2x128xf32>
    %122 = math.exp %121 : vector<2x128xf32>
    %cst_27 = arith.constant 1.000000e+00 : f32
    %123 = vector.broadcast %cst_27 : f32 to vector<2x128xf32>
    %124 = arith.addf %123, %122 : vector<2x128xf32>
    %125 = arith.divf %123, %124 : vector<2x128xf32>
    %126 = math.tanh %120 : vector<2x128xf32>
    %127 = vector.extract_strided_slice %125 {offsets = [0, 0], sizes = [2, 32], strides = [1, 1]} : vector<2x128xf32> to vector<2x32xf32>
    %128 = vector.extract_strided_slice %125 {offsets = [0, 32], sizes = [2, 32], strides = [1, 1]} : vector<2x128xf32> to vector<2x32xf32>
    %129 = vector.extract_strided_slice %126 {offsets = [0, 64], sizes = [2, 32], strides = [1, 1]} : vector<2x128xf32> to vector<2x32xf32>
    %130 = vector.extract_strided_slice %125 {offsets = [0, 96], sizes = [2, 32], strides = [1, 1]} : vector<2x128xf32> to vector<2x32xf32>
    %131 = arith.mulf %128, %111 : vector<2x32xf32>
    %132 = arith.mulf %127, %129 : vector<2x32xf32>
    %133 = arith.addf %131, %132 : vector<2x32xf32>
    %134 = math.tanh %133 : vector<2x32xf32>
    %135 = arith.mulf %130, %134 : vector<2x32xf32>
    %c6_i32 = arith.constant 6 : i32
    %136 = arith.index_cast %c6_i32 : i32 to index
    %c0_28 = arith.constant 0 : index
    %c0_29 = arith.constant 0 : index
    %137 = vector.load %arg1[%136, %c0_28, %c0_29] : memref<8x2x32xf32, #tpu.memory_space<vmem>>, vector<1x2x32xf32>
    %138 = vector.shape_cast %137 : vector<1x2x32xf32> to vector<2x32xf32>
    %139 = tpu.concatenate %138, %135 in 1 : vector<2x32xf32>, vector<2x32xf32> -> vector<2x64xf32>
    %cst_30 = arith.constant dense<0.000000e+00> : vector<2x128xf32>
    %140 = tpu.matmul %139, %0, %cst_30 {dimension_numbers = #tpu.dot_dimension_numbers<[1], [0], [0], [1], [0, 0, 1, 1], [], []>} : vector<2x64xf32>, vector<64x128xf32>, vector<2x128xf32> -> vector<2x128xf32>
    %141 = vector.broadcast %1 : vector<1x128xf32> to vector<2x128xf32>
    %142 = arith.addf %140, %141 : vector<2x128xf32>
    %143 = arith.negf %142 : vector<2x128xf32>
    %144 = math.exp %143 : vector<2x128xf32>
    %cst_31 = arith.constant 1.000000e+00 : f32
    %145 = vector.broadcast %cst_31 : f32 to vector<2x128xf32>
    %146 = arith.addf %145, %144 : vector<2x128xf32>
    %147 = arith.divf %145, %146 : vector<2x128xf32>
    %148 = math.tanh %142 : vector<2x128xf32>
    %149 = vector.extract_strided_slice %147 {offsets = [0, 0], sizes = [2, 32], strides = [1, 1]} : vector<2x128xf32> to vector<2x32xf32>
    %150 = vector.extract_strided_slice %147 {offsets = [0, 32], sizes = [2, 32], strides = [1, 1]} : vector<2x128xf32> to vector<2x32xf32>
    %151 = vector.extract_strided_slice %148 {offsets = [0, 64], sizes = [2, 32], strides = [1, 1]} : vector<2x128xf32> to vector<2x32xf32>
    %152 = vector.extract_strided_slice %147 {offsets = [0, 96], sizes = [2, 32], strides = [1, 1]} : vector<2x128xf32> to vector<2x32xf32>
    %153 = arith.mulf %150, %133 : vector<2x32xf32>
    %154 = arith.mulf %149, %151 : vector<2x32xf32>
    %155 = arith.addf %153, %154 : vector<2x32xf32>
    %156 = math.tanh %155 : vector<2x32xf32>
    %157 = arith.mulf %152, %156 : vector<2x32xf32>
    %c7_i32 = arith.constant 7 : i32
    %158 = arith.index_cast %c7_i32 : i32 to index
    %c0_32 = arith.constant 0 : index
    %c0_33 = arith.constant 0 : index
    %159 = vector.load %arg1[%158, %c0_32, %c0_33] : memref<8x2x32xf32, #tpu.memory_space<vmem>>, vector<1x2x32xf32>
    %160 = vector.shape_cast %159 : vector<1x2x32xf32> to vector<2x32xf32>
    %161 = tpu.concatenate %160, %157 in 1 : vector<2x32xf32>, vector<2x32xf32> -> vector<2x64xf32>
    %cst_34 = arith.constant dense<0.000000e+00> : vector<2x128xf32>
    %162 = tpu.matmul %161, %0, %cst_34 {dimension_numbers = #tpu.dot_dimension_numbers<[1], [0], [0], [1], [0, 0, 1, 1], [], []>} : vector<2x64xf32>, vector<64x128xf32>, vector<2x128xf32> -> vector<2x128xf32>
    %163 = vector.broadcast %1 : vector<1x128xf32> to vector<2x128xf32>
    %164 = arith.addf %162, %163 : vector<2x128xf32>
    %165 = arith.negf %164 : vector<2x128xf32>
    %166 = math.exp %165 : vector<2x128xf32>
    %cst_35 = arith.constant 1.000000e+00 : f32
    %167 = vector.broadcast %cst_35 : f32 to vector<2x128xf32>
    %168 = arith.addf %167, %166 : vector<2x128xf32>
    %169 = arith.divf %167, %168 : vector<2x128xf32>
    %170 = math.tanh %164 : vector<2x128xf32>
    %171 = vector.extract_strided_slice %169 {offsets = [0, 0], sizes = [2, 32], strides = [1, 1]} : vector<2x128xf32> to vector<2x32xf32>
    %172 = vector.extract_strided_slice %169 {offsets = [0, 32], sizes = [2, 32], strides = [1, 1]} : vector<2x128xf32> to vector<2x32xf32>
    %173 = vector.extract_strided_slice %170 {offsets = [0, 64], sizes = [2, 32], strides = [1, 1]} : vector<2x128xf32> to vector<2x32xf32>
    %174 = vector.extract_strided_slice %169 {offsets = [0, 96], sizes = [2, 32], strides = [1, 1]} : vector<2x128xf32> to vector<2x32xf32>
    %175 = arith.mulf %172, %155 : vector<2x32xf32>
    %176 = arith.mulf %171, %173 : vector<2x32xf32>
    %177 = arith.addf %175, %176 : vector<2x32xf32>
    %178 = math.tanh %177 : vector<2x32xf32>
    %179 = arith.mulf %174, %178 : vector<2x32xf32>
    %c8_i32 = arith.constant 8 : i32
    %c0_36 = arith.constant 0 : index
    %c0_37 = arith.constant 0 : index
    %180 = vector.load %arg4[%c0_36, %c0_37] : memref<32x128xf32, #tpu.memory_space<vmem>>, vector<32x128xf32>
    %cst_38 = arith.constant dense<0.000000e+00> : vector<2x128xf32>
    %181 = tpu.matmul %179, %180, %cst_38 {dimension_numbers = #tpu.dot_dimension_numbers<[1], [0], [0], [1], [0, 0, 1, 1], [], []>} : vector<2x32xf32>, vector<32x128xf32>, vector<2x128xf32> -> vector<2x128xf32>
    %c0_39 = arith.constant 0 : index
    %c0_40 = arith.constant 0 : index
    %182 = vector.load %arg5[%c0_39, %c0_40] : memref<1x128xf32, #tpu.memory_space<vmem>>, vector<1x128xf32>
    %183 = vector.broadcast %182 : vector<1x128xf32> to vector<2x128xf32>
    %184 = arith.addf %181, %183 : vector<2x128xf32>
    %c0_41 = arith.constant 0 : index
    %c0_42 = arith.constant 0 : index
    %185 = vector.load %arg6[%c0_41, %c0_42] : memref<2x128xf32, #tpu.memory_space<vmem>>, vector<2x128xf32>
    tpu.vector_store %arg6[%c0_41, %c0_42], %184 {strides = array<i32>} : memref<2x128xf32, #tpu.memory_space<vmem>>, vector<2x128xf32>,
    return
  }
  func.func @transform_0(%arg0: i32) -> (i32, i32, i32) {
    %c0_i32 = arith.constant 0 : i32
    %c0_i32_0 = arith.constant 0 : i32
    %c0_i32_1 = arith.constant 0 : i32
    %c0_i32_2 = arith.constant 0 : i32
    return %c0_i32, %c0_i32_0, %c0_i32_1 : i32, i32, i32
  }
  func.func @transform_1(%arg0: i32) -> (i32, i32) {
    %c0_i32 = arith.constant 0 : i32
    %c0_i32_0 = arith.constant 0 : i32
    %c0_i32_1 = arith.constant 0 : i32
    return %c0_i32, %c0_i32_0 : i32, i32
  }
  func.func @transform_2(%arg0: i32) -> (i32, i32) {
    %c0_i32 = arith.constant 0 : i32
    %c0_i32_0 = arith.constant 0 : i32
    %c0_i32_1 = arith.constant 0 : i32
    return %c0_i32, %c0_i32_0 : i32, i32
  }
  func.func @transform_3(%arg0: i32) -> (i32, i32) {
    %c0_i32 = arith.constant 0 : i32
    %c0_i32_0 = arith.constant 0 : i32
    %c0_i32_1 = arith.constant 0 : i32
    return %c0_i32, %c0_i32_0 : i32, i32
  }
  func.func @transform_4(%arg0: i32) -> (i32, i32) {
    %c0_i32 = arith.constant 0 : i32
    %c0_i32_0 = arith.constant 0 : i32
    %c0_i32_1 = arith.constant 0 : i32
    return %c0_i32, %c0_i32_0 : i32, i32
  }
  func.func @transform_5(%arg0: i32) -> (i32, i32) {
    %c0_i32 = arith.constant 0 : i32
    %c0_i32_0 = arith.constant 0 : i32
    %c0_i32_1 = arith.constant 0 : i32
    return %c0_i32, %c0_i32_0 : i32, i32
  }
}

</mosaic_0001>

<bundles_post_ra>
// kernel: tpu_custom_call.1
= control target key start
LH: loop header
LB: loop body
LE: loop exit
PB: predicated region body
PF: predicated region fallthrough
CT: control target
= control target key end

     0   :  { %10 = vsyncpa [#allocation3], 0  ;;  %s1795_s0 = inlined_call_operand.hbm [shape: f32[8,2,32], index: 0, kind: input, shape index: {}]   ;;  %s1796_s1 = inlined_call_operand.hbm [shape: f32[64,128], index: 1, kind: input, shape index: {}]   ;;  %s1797_s2 = inlined_call_operand.vmem [shape: f32[1,128], index: 2, kind: input, shape index: {}]   ;;  %s1798_s3 = inlined_call_operand.hbm [shape: f32[32,128], index: 3, kind: input, shape index: {}]   ;;  %s1799_s4 = inlined_call_operand.vmem [shape: f32[1,128], index: 4, kind: input, shape index: {}]   ;;  %s1800_s5 = inlined_call_operand.hbm [shape: f32[2,128], index: 5, kind: output, shape index: {}]  }
   0x1   :  { %11 = vsyncpa [#allocation6], 0 }
   0x2   :  { %12 = vsyncpa [#allocation4], 0  ;;  %s1540_s18 = smov [#allocation5]   ;;  %s1446_s22 = scalar_lea.hbm %s1796_s1, 1024 }
   0x3   :  { %s30_s19 = sshll.u32 %s1540_s18, 4  ;;  %p1447_p0 = scmp.ne.s32.totalorder %s1796_s1, %s1446_s22  ;;  %s31_s19 = int_to_ptr.vmem [resolvable:$true] %s30_s19 }
   0x4   :  { %p1450_p1 = scmp.lt.u32.totalorder %s1446_s22, %s1796_s1 }
   0x6   :  { %p1452_p2 = pnand %p1450_p1, %p1447_p0 }
   0x8   :  { %1455 = shalt.err (!%p1452_p2)
}
   0x9   :  { %s1456_s27 = scalar_lea.vmem %s31_s19, 1024  ;;  %p1461_p4 = scmp.lt.s32.totalorder %s31_s19, %s31_s19 }
   0xa   :  { %p1457_p3 = scmp.ne.s32.totalorder %s31_s19, %s1456_s27  ;;  %p1462_p5 = scmp.lt.s32.totalorder %s1456_s27, %s1456_s27 }
   0xc   :  { %p1463_p6 = por %p1462_p5, %p1461_p4 }
   0xe   :  { %p1464_p7 = pnand %p1463_p6, %p1457_p3 }
  0x10   :  { %1467 = shalt.err (!%p1464_p7)
}
  0x11   :  { %s1541_s28 = smov 128   ;;  %s1542_s29 = smov 8  }
  0x12   :  { %36 = dma.hbm_to_vmem [thread:$0]  %s1796_s1, 1024, %s31_s19, [#allocation6], %s1541_s28, %s1541_s28, %s1542_s29  }
  0x13   :  { %s1543_s7 = smov [#allocation2]   ;;  %s1468_s11 = scalar_lea.hbm %s1795_s0, 256 }
  0x14   :  { %s18_s8 = sshll.u32 %s1543_s7, 4  ;;  %p1469_p8 = scmp.ne.s32.totalorder %s1795_s0, %s1468_s11  ;;  %s19_s8 = int_to_ptr.vmem [resolvable:$true] %s18_s8 }
  0x15   :  { %p1472_p9 = scmp.lt.u32.totalorder %s1468_s11, %s1795_s0 }
  0x17   :  { %p1474_p10 = pnand %p1472_p9, %p1469_p8 }
  0x19   :  { %1477 = shalt.err (!%p1474_p10)
}
  0x1a   :  { %s1478_s16 = scalar_lea.vmem %s19_s8, 256  ;;  %p1483_p12 = scmp.lt.s32.totalorder %s19_s8, %s19_s8 }
  0x1b   :  { %p1479_p11 = scmp.ne.s32.totalorder %s19_s8, %s1478_s16  ;;  %p1484_p13 = scmp.lt.s32.totalorder %s1478_s16, %s1478_s16 }
  0x1d   :  { %p1485_p0 = por %p1484_p13, %p1483_p12 }
  0x1f   :  { %p1486_p1 = pnand %p1485_p0, %p1479_p11 }
  0x21   :  { %1489 = shalt.err (!%p1486_p1)
}
  0x22   :  { %s1544_s1 = smov 32   ;;  %s1545_s17 = smov 2  }
  0x23   :  { %24 = dma.hbm_to_vmem [thread:$0]  %s1795_s0, 256, %s19_s8, [#allocation3], %s1544_s1, %s1544_s1, %s1545_s17  }
  0x24   :  { %s1546_s20 = smov [#allocation7]   ;;  %s1490_s24 = scalar_lea.hbm %s1798_s3, 512 }
  0x25   :  { %s44_s21 = sshll.u32 %s1546_s20, 4  ;;  %p1491_p2 = scmp.ne.s32.totalorder %s1798_s3, %s1490_s24  ;;  %s45_s21 = int_to_ptr.vmem [resolvable:$true] %s44_s21 }
  0x26   :  { %p1494_p3 = scmp.lt.u32.totalorder %s1490_s24, %s1798_s3 }
  0x28   :  { %p1496_p4 = pnand %p1494_p3, %p1491_p2 }
  0x2a   :  { %1499 = shalt.err (!%p1496_p4)
}
  0x2b   :  { %s1500_s6 = scalar_lea.vmem %s45_s21, 512  ;;  %p1505_p6 = scmp.lt.s32.totalorder %s45_s21, %s45_s21 }
  0x2c   :  { %p1501_p5 = scmp.ne.s32.totalorder %s45_s21, %s1500_s6  ;;  %p1506_p7 = scmp.lt.s32.totalorder %s1500_s6, %s1500_s6 }
  0x2e   :  { %p1507_p8 = por %p1506_p7, %p1505_p6 }
  0x30   :  { %p1508_p9 = pnand %p1507_p8, %p1501_p5 }
  0x32   :  { %1511 = shalt.err (!%p1508_p9)
}
  0x33   :  { %50 = dma.hbm_to_vmem [thread:$0]  %s1798_s3, 512, %s45_s21, [#allocation6], %s1541_s28, %s1541_s28, %s1542_s29  }
  0x34   :  { %1534 = dma.done.wait [#allocation3], 256  }
  0x35   :  { %1535 = vsyncadd [#allocation3], 4294967040 }
  0x36   :  { %1536 = dma.done.wait [#allocation6], 1536  }
  0x37   :  { %1537 = vsyncadd [#allocation6], 4294965760  ;;  %v1547_v0 = vmov 0.0|0.0   ;;  %vm1548_vm0 = vmmov 0   ;;  %v1549_v1 = vmov 0.0   ;;  %v62_v2 = vld [vmem:[#allocation5] sm:$0xff] }
  0x38   :  { %1268 = vmatprep.subr.bf16.mxu0 %v1547_v0  ;;  %1121 = vmatprep.mubr.msk.f32.mxu0 %vm1548_vm0, %v1549_v1  ;;  %v63_v3 = vld [vmem:[#allocation5 + $0x8] sm:$0xff]  ;;  %v64_v4 = vld [vmem:[#allocation5 + $0x10] sm:$0xff]  ;;  %v65_v6 = vld [vmem:[#allocation5 + $0x18] sm:$0xff]  ;;  %vm72_vm1 = vcmask 261120   ;;  %vm80_vm2 = vcmask 523264   ;;  %s1550_s29 = smov 64  }
  0x39   :  { %1280 = vmatprep.subr.bf16.mxu1 %v1547_v0  ;;  %1140 = vmatprep.mubr.msk.f32.mxu1 %vm1548_vm0, %v1549_v1  ;;  %v1632_v5 = vpack.c.bf16 %v63_v3, %v62_v2  ;;  %v1635_v7 = vpack.c.bf16 %v65_v6, %v64_v4  ;;  %v66_v8 = vld [vmem:[#allocation5 + $0x20] sm:$0xff]  ;;  %v67_v9 = vld [vmem:[#allocation5 + $0x28] sm:$0xff]  ;;  %v68_v11 = vld [vmem:[#allocation5 + $0x30] sm:$0xff]  ;;  %s1551_s9 = smov [#allocation8]  }
  0x3a   :  { %v1641_v10 = vpack.c.bf16 %v67_v9, %v66_v8  ;;  %v69_v12 = vld [vmem:[#allocation5 + $0x38] sm:$0xff]  ;;  %v71_v14 = vld [vmem:[#allocation2] sm:$0x3]  ;;  %v179_v33 = vld [vmem:[#allocation2 + $0x2] sm:$0x3]  ;;  %s999_s10 = sshll.u32 %s1551_s9, 4  ;;  %s1000_s10 = int_to_ptr.vmem [resolvable:$true] %s999_s10 }
  0x3b   :  { %1270 = vmatpush3.bf16.msra.mxu0 %v1632_v5  ;;  %1282 = vmatpush3.bf16.msra.mxu1 %v1632_v5  ;;  %v1647_v13 = vpack.c.bf16 %v69_v12, %v68_v11  ;;  %v73_v15 = vsel %vm72_vm1, %v71_v14, 0.0  ;;  %v1671_v16 = vld [vmem:[%s1797_s2] ss:$0 sm:$0xff]  ;;  %v283_v52 = vld [vmem:[#allocation2 + $0x4] sm:$0x3]  ;;  %s1512_s11 = scalar_lea.vmem %s1000_s10, 32  ;;  %p1517_p11 = scmp.lt.s32.totalorder %s1000_s10, %s1000_s10 }
  0x3c   :  { %1271 = vmatprep.subr.bf16.mxu0 %v1547_v0  ;;  %1283 = vmatprep.subr.bf16.mxu1 %v1547_v0  ;;  %v387_v12 = vld [vmem:[#allocation2 + $0x6] sm:$0x3]  ;;  %p1513_p10 = scmp.ne.s32.totalorder %s1000_s10, %s1512_s11  ;;  %p1518_p12 = scmp.lt.s32.totalorder %s1512_s11, %s1512_s11 }
  0x3e   :  { %p1519_p13 = por %p1518_p12, %p1517_p11 }
  0x3f   :  { %1273 = vmatpush3.bf16.msra.mxu0 %v1635_v7  ;;  %1285 = vmatpush3.bf16.msra.mxu1 %v1635_v7 }
  0x40   :  { %1274 = vmatprep.subr.bf16.mxu0 %v1547_v0  ;;  %1286 = vmatprep.subr.bf16.mxu1 %v1547_v0  ;;  %p1520_p0 = pnand %p1519_p13, %p1513_p10 }
  0x43   :  { %1276 = vmatpush3.bf16.msra.mxu0 %v1641_v10  ;;  %1288 = vmatpush3.bf16.msra.mxu1 %v1641_v10 }
  0x44   :  { %1277 = vmatprep.subr.bf16.mxu0 %v1547_v0  ;;  %1289 = vmatprep.subr.bf16.mxu1 %v1547_v0 }
  0x47   :  { %1279 = vmatpush3.bf16.msra.mxu0 %v1647_v13  ;;  %1291 = vmatpush3.bf16.msra.mxu1 %v1647_v13 }
  0x48   :  { %1292 = vmatprep.subr.bf16.mxu0 %v1547_v0  ;;  %1304 = vmatprep.subr.bf16.mxu1 %v1547_v0 }
  0x4a   :  { %1122 = vmatmul.mubr.msk.f32.vlgmr.msra.gmra.mrb[0].mxu0 %vm80_vm2, %v73_v15 }
  0x4b   :  { %1294 = vmatpush3.bf16.msra.mxu0 %v1632_v5  ;;  %1159 = vmatprep.mubr.msk.f32.mxu0 %vm1548_vm0, %v1549_v1 }
  0x4c   :  { %1295 = vmatprep.subr.bf16.mxu0 %v1547_v0 }
  0x4f   :  { %1297 = vmatpush3.bf16.msra.mxu0 %v1635_v7 }
  0x50   :  { %1298 = vmatprep.subr.bf16.mxu0 %v1547_v0 }
  0x53   :  { %1300 = vmatpush3.bf16.msra.mxu0 %v1641_v10 }
  0x54   :  { %1301 = vmatprep.subr.bf16.mxu0 %v1547_v0 }
  0x57   :  { %1303 = vmatpush3.bf16.msra.mxu0 %v1647_v13 }
  0x58   :  { %1316 = vmatprep.subr.bf16.mxu0 %v1547_v0 }
 0x11d   :  { %v150_v17 = vpop.f32.mrb[0].mxu0 }
 0x11e   :  { %v151_v18 = vadd.f32 %v1671_v16, %v150_v17  ;;  %v1123_v19 = vpop.f32.mrb[1].mxu0 }
 0x120   :  { %1382 = vtanh.f32 %v151_v18  ;;  %v1011_v21 = vmul.f32 -1.442695, %v151_v18 }
 0x122   :  { %1384 = vpow2.f32 %v1011_v21 }
 0x12a   :  { %v1383_v20 = vpop.eup %1382 }
 0x12b   :  { %163 = vrot.lane.b32.xlu0 %v1383_v20, %s1550_s29 }
 0x12c   :  { %v1385_v22 = vpop.eup %1384 }
 0x12d   :  { %v157_v23 = vadd.f32 1.0, %v1385_v22 }
 0x12f   :  { %1386 = vrcp.f32 %v157_v23 }
 0x139   :  { %v1387_v24 = vpop.eup %1386 }
 0x13a   :  { %v161_v27 = vmul.f32 0.0, %v1387_v24 }
 0x19d   :  { %v164_v25 = vpop.permute.xlu0 %163 }
 0x19e   :  { %v166_v26 = vmul.f32 %v1387_v24, %v164_v25 }
 0x1a0   :  { %168 = vrot.lane.b32.xlu0 %v166_v26, %s1544_s1 }
 0x212   :  { %v169_v28 = vpop.permute.xlu0 %168 }
 0x213   :  { %v171_v29 = vadd.f32 %v169_v28, %v161_v27 }
 0x215   :  { %1388 = vtanh.f32 %v171_v29 }
 0x21f   :  { %v1389_v30 = vpop.eup %1388 }
 0x220   :  { %174 = vrot.lane.b32.xlu1 %v1389_v30, %s1550_s29 }
 0x292   :  { %v175_v31 = vpop.permute.xlu1 %174 }
 0x293   :  { %v177_v32 = vmul.f32 %v1387_v24, %v175_v31 }
 0x295   :  { %181 = vrot.lane.b32.xlu1 %v177_v32, %s1550_s29 }
 0x307   :  { %v182_v34 = vpop.permute.xlu1 %181 }
 0x308   :  { %v184_v35 = vsel %vm72_vm1, %v179_v33, %v182_v34  ;;  %v491_v33 = vld [vmem:[#allocation2 + $0x8] sm:$0x3] }
 0x309   :  { %1141 = vmatmul.mubr.msk.f32.vlgmr.msra.gmra.mrb[0].mxu1 %vm80_vm2, %v184_v35 }
 0x30a   :  { %1306 = vmatpush3.bf16.msra.mxu1 %v1632_v5  ;;  %1178 = vmatprep.mubr.msk.f32.mxu1 %vm1548_vm0, %v1549_v1 }
 0x30b   :  { %1307 = vmatprep.subr.bf16.mxu1 %v1547_v0 }
 0x30e   :  { %1309 = vmatpush3.bf16.msra.mxu1 %v1635_v7 }
 0x30f   :  { %1310 = vmatprep.subr.bf16.mxu1 %v1547_v0 }
 0x312   :  { %1312 = vmatpush3.bf16.msra.mxu1 %v1641_v10 }
 0x313   :  { %1313 = vmatprep.subr.bf16.mxu1 %v1547_v0 }
 0x316   :  { %1315 = vmatpush3.bf16.msra.mxu1 %v1647_v13 }
 0x317   :  { %1328 = vmatprep.subr.bf16.mxu1 %v1547_v0 }
 0x3dc   :  { %v254_v36 = vpop.f32.mrb[0].mxu1 }
 0x3dd   :  { %v255_v37 = vadd.f32 %v1671_v16, %v254_v36  ;;  %v1142_v38 = vpop.f32.mrb[1].mxu1 }
 0x3df   :  { %1390 = vtanh.f32 %v255_v37  ;;  %v1013_v40 = vmul.f32 -1.442695, %v255_v37 }
 0x3e1   :  { %1392 = vpow2.f32 %v1013_v40 }
 0x3e9   :  { %v1391_v39 = vpop.eup %1390 }
 0x3ea   :  { %267 = vrot.lane.b32.xlu0 %v1391_v39, %s1550_s29 }
 0x3eb   :  { %v1393_v41 = vpop.eup %1392 }
 0x3ec   :  { %v261_v42 = vadd.f32 1.0, %v1393_v41 }
 0x3ee   :  { %1394 = vrcp.f32 %v261_v42 }
 0x3f8   :  { %v1395_v43 = vpop.eup %1394 }
 0x3f9   :  { %v265_v46 = vmul.f32 %v1395_v43, %v171_v29 }
 0x45c   :  { %v268_v44 = vpop.permute.xlu0 %267 }
 0x45d   :  { %v270_v45 = vmul.f32 %v1395_v43, %v268_v44 }
 0x45f   :  { %272 = vrot.lane.b32.xlu1 %v270_v45, %s1544_s1 }
 0x4d1   :  { %v273_v47 = vpop.permute.xlu1 %272 }
 0x4d2   :  { %v275_v48 = vadd.f32 %v273_v47, %v265_v46 }
 0x4d4   :  { %1396 = vtanh.f32 %v275_v48 }
 0x4de   :  { %v1397_v49 = vpop.eup %1396 }
 0x4df   :  { %278 = vrot.lane.b32.xlu0 %v1397_v49, %s1550_s29 }
 0x551   :  { %v279_v50 = vpop.permute.xlu0 %278 }
 0x552   :  { %v281_v51 = vmul.f32 %v1395_v43, %v279_v50 }
 0x554   :  { %285 = vrot.lane.b32.xlu1 %v281_v51, %s1550_s29 }
 0x5c6   :  { %v286_v53 = vpop.permute.xlu1 %285 }
 0x5c7   :  { %v288_v54 = vsel %vm72_vm1, %v283_v52, %v286_v53  ;;  %v595_v52 = vld [vmem:[#allocation2 + $0xa] sm:$0x3] }
 0x5c8   :  { %1160 = vmatmul.mubr.msk.f32.vlgmr.msra.gmra.mrb[2].mxu0 %vm80_vm2, %v288_v54 }
 0x5c9   :  { %1318 = vmatpush3.bf16.msra.mxu0 %v1632_v5  ;;  %1197 = vmatprep.mubr.msk.f32.mxu0 %vm1548_vm0, %v1549_v1 }
 0x5ca   :  { %1319 = vmatprep.subr.bf16.mxu0 %v1547_v0 }
 0x5cd   :  { %1321 = vmatpush3.bf16.msra.mxu0 %v1635_v7 }
 0x5ce   :  { %1322 = vmatprep.subr.bf16.mxu0 %v1547_v0 }
 0x5d1   :  { %1324 = vmatpush3.bf16.msra.mxu0 %v1641_v10 }
 0x5d2   :  { %1325 = vmatprep.subr.bf16.mxu0 %v1547_v0 }
 0x5d5   :  { %1327 = vmatpush3.bf16.msra.mxu0 %v1647_v13 }
 0x5d6   :  { %1340 = vmatprep.subr.bf16.mxu0 %v1547_v0 }
 0x69b   :  { %v358_v55 = vpop.f32.mrb[2].mxu0 }
 0x69c   :  { %v359_v56 = vadd.f32 %v1671_v16, %v358_v55  ;;  %v1161_v57 = vpop.f32.mrb[3].mxu0 }
 0x69e   :  { %1398 = vtanh.f32 %v359_v56  ;;  %v1015_v59 = vmul.f32 -1.442695, %v359_v56 }
 0x6a0   :  { %1400 = vpow2.f32 %v1015_v59 }
 0x6a8   :  { %v1399_v58 = vpop.eup %1398 }
 0x6a9   :  { %371 = vrot.lane.b32.xlu0 %v1399_v58, %s1550_s29 }
 0x6aa   :  { %v1401_v60 = vpop.eup %1400 }
 0x6ab   :  { %v365_v61 = vadd.f32 1.0, %v1401_v60 }
 0x6ad   :  { %1402 = vrcp.f32 %v365_v61 }
 0x6b7   :  { %v1403_v62 = vpop.eup %1402 }
 0x6b8   :  { %v369_v3 = vmul.f32 %v1403_v62, %v275_v48 }
 0x71b   :  { %v372_v63 = vpop.permute.xlu0 %371 }
 0x71c   :  { %v374_v2 = vmul.f32 %v1403_v62, %v372_v63 }
 0x71e   :  { %376 = vrot.lane.b32.xlu1 %v374_v2, %s1544_s1 }
 0x790   :  { %v377_v4 = vpop.permute.xlu1 %376 }
 0x791   :  { %v379_v6 = vadd.f32 %v377_v4, %v369_v3 }
 0x793   :  { %1404 = vtanh.f32 %v379_v6 }
 0x79d   :  { %v1405_v8 = vpop.eup %1404 }
 0x79e   :  { %382 = vrot.lane.b32.xlu0 %v1405_v8, %s1550_s29 }
 0x810   :  { %v383_v9 = vpop.permute.xlu0 %382 }
 0x811   :  { %v385_v11 = vmul.f32 %v1403_v62, %v383_v9 }
 0x813   :  { %389 = vrot.lane.b32.xlu1 %v385_v11, %s1550_s29 }
 0x885   :  { %v390_v14 = vpop.permute.xlu1 %389 }
 0x886   :  { %v392_v15 = vsel %vm72_vm1, %v387_v12, %v390_v14 }
 0x887   :  { %1179 = vmatmul.mubr.msk.f32.vlgmr.msra.gmra.mrb[2].mxu1 %vm80_vm2, %v392_v15 }
 0x888   :  { %1330 = vmatpush3.bf16.msra.mxu1 %v1632_v5  ;;  %1216 = vmatprep.mubr.msk.f32.mxu1 %vm1548_vm0, %v1549_v1 }
 0x889   :  { %1331 = vmatprep.subr.bf16.mxu1 %v1547_v0 }
 0x88c   :  { %1333 = vmatpush3.bf16.msra.mxu1 %v1635_v7 }
 0x88d   :  { %1334 = vmatprep.subr.bf16.mxu1 %v1547_v0 }
 0x890   :  { %1336 = vmatpush3.bf16.msra.mxu1 %v1641_v10 }
 0x891   :  { %1337 = vmatprep.subr.bf16.mxu1 %v1547_v0 }
 0x894   :  { %1339 = vmatpush3.bf16.msra.mxu1 %v1647_v13 }
 0x895   :  { %1352 = vmatprep.subr.bf16.mxu1 %v1547_v0 }
 0x95a   :  { %v462_v17 = vpop.f32.mrb[2].mxu1 }
 0x95b   :  { %v463_v18 = vadd.f32 %v1671_v16, %v462_v17  ;;  %v1180_v19 = vpop.f32.mrb[3].mxu1 }
 0x95d   :  { %1406 = vtanh.f32 %v463_v18  ;;  %v1017_v21 = vmul.f32 -1.442695, %v463_v18 }
 0x95f   :  { %1408 = vpow2.f32 %v1017_v21 }
 0x967   :  { %v1407_v20 = vpop.eup %1406 }
 0x968   :  { %475 = vrot.lane.b32.xlu0 %v1407_v20, %s1550_s29 }
 0x969   :  { %v1409_v22 = vpop.eup %1408 }
 0x96a   :  { %v469_v23 = vadd.f32 1.0, %v1409_v22 }
 0x96c   :  { %1410 = vrcp.f32 %v469_v23 }
 0x976   :  { %v1411_v24 = vpop.eup %1410 }
 0x977   :  { %v473_v27 = vmul.f32 %v1411_v24, %v379_v6  ;;  %v699_v6 = vld [vmem:[#allocation2 + $0xc] sm:$0x3] }
 0x9da   :  { %v476_v25 = vpop.permute.xlu0 %475 }
 0x9db   :  { %v478_v26 = vmul.f32 %v1411_v24, %v476_v25 }
 0x9dd   :  { %480 = vrot.lane.b32.xlu1 %v478_v26, %s1544_s1 }
 0xa4f   :  { %v481_v28 = vpop.permute.xlu1 %480 }
 0xa50   :  { %v483_v29 = vadd.f32 %v481_v28, %v473_v27  ;;  %v803_v28 = vld [vmem:[#allocation2 + $0xe] sm:$0x3] }
 0xa52   :  { %1412 = vtanh.f32 %v483_v29 }
 0xa5c   :  { %v1413_v30 = vpop.eup %1412 }
 0xa5d   :  { %486 = vrot.lane.b32.xlu0 %v1413_v30, %s1550_s29 }
 0xacf   :  { %v487_v31 = vpop.permute.xlu0 %486 }
 0xad0   :  { %v489_v32 = vmul.f32 %v1411_v24, %v487_v31 }
 0xad2   :  { %493 = vrot.lane.b32.xlu1 %v489_v32, %s1550_s29 }
 0xb44   :  { %v494_v34 = vpop.permute.xlu1 %493 }
 0xb45   :  { %v496_v35 = vsel %vm72_vm1, %v491_v33, %v494_v34 }
 0xb46   :  { %1198 = vmatmul.mubr.msk.f32.vlgmr.msra.gmra.mrb[4].mxu0 %vm80_vm2, %v496_v35 }
 0xb47   :  { %1342 = vmatpush3.bf16.msra.mxu0 %v1632_v5  ;;  %1235 = vmatprep.mubr.msk.f32.mxu0 %vm1548_vm0, %v1549_v1 }
 0xb48   :  { %1343 = vmatprep.subr.bf16.mxu0 %v1547_v0 }
 0xb4b   :  { %1345 = vmatpush3.bf16.msra.mxu0 %v1635_v7 }
 0xb4c   :  { %1346 = vmatprep.subr.bf16.mxu0 %v1547_v0 }
 0xb4f   :  { %1348 = vmatpush3.bf16.msra.mxu0 %v1641_v10 }
 0xb50   :  { %1349 = vmatprep.subr.bf16.mxu0 %v1547_v0 }
 0xb53   :  { %1351 = vmatpush3.bf16.msra.mxu0 %v1647_v13 }
 0xb54   :  { %1364 = vmatprep.subr.bf16.mxu0 %v1547_v0 }
 0xc19   :  { %v566_v36 = vpop.f32.mrb[4].mxu0 }
 0xc1a   :  { %v567_v37 = vadd.f32 %v1671_v16, %v566_v36  ;;  %v1199_v38 = vpop.f32.mrb[5].mxu0 }
 0xc1c   :  { %1414 = vtanh.f32 %v567_v37  ;;  %v1019_v40 = vmul.f32 -1.442695, %v567_v37 }
 0xc1e   :  { %1416 = vpow2.f32 %v1019_v40 }
 0xc26   :  { %v1415_v39 = vpop.eup %1414 }
 0xc27   :  { %579 = vrot.lane.b32.xlu0 %v1415_v39, %s1550_s29 }
 0xc28   :  { %v1417_v41 = vpop.eup %1416 }
 0xc29   :  { %v573_v42 = vadd.f32 1.0, %v1417_v41 }
 0xc2b   :  { %1418 = vrcp.f32 %v573_v42 }
 0xc35   :  { %v1419_v43 = vpop.eup %1418 }
 0xc36   :  { %v577_v46 = vmul.f32 %v1419_v43, %v483_v29 }
 0xc99   :  { %v580_v44 = vpop.permute.xlu0 %579 }
 0xc9a   :  { %v582_v45 = vmul.f32 %v1419_v43, %v580_v44  ;;  %v907_v44 = vld [vmem:[#allocation7 + $0x8] sm:$0xff] }
 0xc9c   :  { %584 = vrot.lane.b32.xlu1 %v582_v45, %s1544_s1  ;;  %v908_v45 = vld [vmem:[#allocation7 + $0x10] sm:$0xff] }
 0xd0e   :  { %v585_v47 = vpop.permute.xlu1 %584 }
 0xd0f   :  { %v587_v48 = vadd.f32 %v585_v47, %v577_v46  ;;  %v909_v47 = vld [vmem:[#allocation7 + $0x18] sm:$0xff] }
 0xd11   :  { %1420 = vtanh.f32 %v587_v48 }
 0xd1b   :  { %v1421_v49 = vpop.eup %1420 }
 0xd1c   :  { %590 = vrot.lane.b32.xlu0 %v1421_v49, %s1550_s29 }
 0xd8e   :  { %v591_v50 = vpop.permute.xlu0 %590 }
 0xd8f   :  { %v593_v51 = vmul.f32 %v1419_v43, %v591_v50 }
 0xd91   :  { %597 = vrot.lane.b32.xlu1 %v593_v51, %s1550_s29 }
 0xe03   :  { %v598_v53 = vpop.permute.xlu1 %597 }
 0xe04   :  { %v600_v54 = vsel %vm72_vm1, %v595_v52, %v598_v53  ;;  %v1026_v53 = vld [vmem:[%s1799_s4] ss:$0 sm:$0xff] }
 0xe05   :  { %1217 = vmatmul.mubr.msk.f32.vlgmr.msra.gmra.mrb[4].mxu1 %vm80_vm2, %v600_v54 }
 0xe06   :  { %1354 = vmatpush3.bf16.msra.mxu1 %v1632_v5  ;;  %1254 = vmatprep.mubr.msk.f32.mxu1 %vm1548_vm0, %v1549_v1 }
 0xe07   :  { %1355 = vmatprep.subr.bf16.mxu1 %v1547_v0 }
 0xe0a   :  { %1357 = vmatpush3.bf16.msra.mxu1 %v1635_v7 }
 0xe0b   :  { %1358 = vmatprep.subr.bf16.mxu1 %v1547_v0 }
 0xe0e   :  { %1360 = vmatpush3.bf16.msra.mxu1 %v1641_v10 }
 0xe0f   :  { %1361 = vmatprep.subr.bf16.mxu1 %v1547_v0 }
 0xe12   :  { %1363 = vmatpush3.bf16.msra.mxu1 %v1647_v13 }
 0xed8   :  { %v670_v55 = vpop.f32.mrb[4].mxu1 }
 0xed9   :  { %v671_v56 = vadd.f32 %v1671_v16, %v670_v55  ;;  %v1218_v57 = vpop.f32.mrb[5].mxu1 }
 0xedb   :  { %1422 = vtanh.f32 %v671_v56  ;;  %v1021_v58 = vmul.f32 -1.442695, %v671_v56 }
 0xedd   :  { %1424 = vpow2.f32 %v1021_v58 }
 0xee5   :  { %v1423_v5 = vpop.eup %1422 }
 0xee6   :  { %683 = vrot.lane.b32.xlu0 %v1423_v5, %s1550_s29 }
 0xee7   :  { %v1425_v59 = vpop.eup %1424 }
 0xee8   :  { %v677_v7 = vadd.f32 1.0, %v1425_v59 }
 0xeea   :  { %1426 = vrcp.f32 %v677_v7 }
 0xef4   :  { %v1427_v60 = vpop.eup %1426 }
 0xef5   :  { %v681_v62 = vmul.f32 %v1427_v60, %v587_v48  ;;  %v1368_v48 = vpack.c.bf16 %v909_v47, %v908_v45 }
 0xf58   :  { %v684_v61 = vpop.permute.xlu0 %683 }
 0xf59   :  { %v686_v10 = vmul.f32 %v1427_v60, %v684_v61 }
 0xf5b   :  { %688 = vrot.lane.b32.xlu1 %v686_v10, %s1544_s1 }
 0xfcd   :  { %v689_v13 = vpop.permute.xlu1 %688 }
 0xfce   :  { %v691_v63 = vadd.f32 %v689_v13, %v681_v62 }
 0xfd0   :  { %1428 = vtanh.f32 %v691_v63 }
 0xfda   :  { %v1429_v2 = vpop.eup %1428 }
 0xfdb   :  { %694 = vrot.lane.b32.xlu0 %v1429_v2, %s1550_s29 }
0x104d   :  { %v695_v3 = vpop.permute.xlu0 %694 }
0x104e   :  { %v697_v4 = vmul.f32 %v1427_v60, %v695_v3 }
0x1050   :  { %701 = vrot.lane.b32.xlu1 %v697_v4, %s1550_s29 }
0x10c2   :  { %v702_v8 = vpop.permute.xlu1 %701 }
0x10c3   :  { %v704_v9 = vsel %vm72_vm1, %v699_v6, %v702_v8 }
0x10c4   :  { %1236 = vmatmul.mubr.msk.f32.vlgmr.msra.gmra.mrb[6].mxu0 %vm80_vm2, %v704_v9 }
0x10c5   :  { %1265 = vmatprep.mubr.msk.f32.mxu0 %vm1548_vm0, %v1549_v1 }
0x1197   :  { %v774_v11 = vpop.f32.mrb[6].mxu0 }
0x1198   :  { %v775_v12 = vadd.f32 %v1671_v16, %v774_v11  ;;  %v1237_v14 = vpop.f32.mrb[7].mxu0 }
0x119a   :  { %1430 = vtanh.f32 %v775_v12  ;;  %v1023_v17 = vmul.f32 -1.442695, %v775_v12 }
0x119c   :  { %1432 = vpow2.f32 %v1023_v17 }
0x11a4   :  { %v1431_v15 = vpop.eup %1430 }
0x11a5   :  { %787 = vrot.lane.b32.xlu0 %v1431_v15, %s1550_s29 }
0x11a6   :  { %v1433_v18 = vpop.eup %1432 }
0x11a7   :  { %v781_v19 = vadd.f32 1.0, %v1433_v18 }
0x11a9   :  { %1434 = vrcp.f32 %v781_v19 }
0x11b3   :  { %v1435_v20 = vpop.eup %1434 }
0x11b4   :  { %v785_v23 = vmul.f32 %v1435_v20, %v691_v63 }
0x1217   :  { %v788_v21 = vpop.permute.xlu0 %787 }
0x1218   :  { %v790_v22 = vmul.f32 %v1435_v20, %v788_v21 }
0x121a   :  { %792 = vrot.lane.b32.xlu1 %v790_v22, %s1544_s1 }
0x128c   :  { %v793_v1 = vpop.permute.xlu1 %792 }
0x128d   :  { %v795_v24 = vadd.f32 %v793_v1, %v785_v23 }
0x128f   :  { %1436 = vtanh.f32 %v795_v24 }
0x1299   :  { %v1437_v25 = vpop.eup %1436 }
0x129a   :  { %798 = vrot.lane.b32.xlu0 %v1437_v25, %s1550_s29 }
0x130c   :  { %v799_v26 = vpop.permute.xlu0 %798 }
0x130d   :  { %v801_v27 = vmul.f32 %v1435_v20, %v799_v26 }
0x130f   :  { %805 = vrot.lane.b32.xlu1 %v801_v27, %s1550_s29 }
0x1381   :  { %v806_v29 = vpop.permute.xlu1 %805 }
0x1382   :  { %v808_v30 = vsel %vm72_vm1, %v803_v28, %v806_v29 }
0x1383   :  { %1255 = vmatmul.mubr.msk.f32.vlgmr.msra.gmra.mrb[6].mxu1 %vm80_vm2, %v808_v30 }
0x1456   :  { %v878_v31 = vpop.f32.mrb[6].mxu1 }
0x1457   :  { %v879_v32 = vadd.f32 %v1671_v16, %v878_v31  ;;  %v1256_v33 = vpop.f32.mrb[7].mxu1  ;;  %v906_v16 = vld [vmem:[#allocation7] sm:$0xff] }
0x1458   :  { %v1365_v46 = vpack.c.bf16 %v907_v44, %v906_v16 }
0x1459   :  { %1438 = vtanh.f32 %v879_v32  ;;  %v1025_v35 = vmul.f32 -1.442695, %v879_v32 }
0x145a   :  { %1366 = vmatpush3.bf16.msra.mxu0 %v1365_v46 }
0x145b   :  { %1440 = vpow2.f32 %v1025_v35  ;;  %1367 = vmatprep.subr.bf16.mxu0 %v1547_v0 }
0x145e   :  { %1369 = vmatpush3.bf16.msra.mxu0 %v1368_v48 }
0x1463   :  { %v1439_v34 = vpop.eup %1438 }
0x1464   :  { %891 = vrot.lane.b32.xlu0 %v1439_v34, %s1550_s29 }
0x1465   :  { %v1441_v36 = vpop.eup %1440 }
0x1466   :  { %v885_v37 = vadd.f32 1.0, %v1441_v36 }
0x1468   :  { %1442 = vrcp.f32 %v885_v37 }
0x1472   :  { %v1443_v38 = vpop.eup %1442 }
0x1473   :  { %v889_v41 = vmul.f32 %v1443_v38, %v795_v24 }
0x14d6   :  { %v892_v39 = vpop.permute.xlu0 %891 }
0x14d7   :  { %v894_v40 = vmul.f32 %v1443_v38, %v892_v39 }
0x14d9   :  { %896 = vrot.lane.b32.xlu1 %v894_v40, %s1544_s1 }
0x154b   :  { %v897_v42 = vpop.permute.xlu1 %896 }
0x154c   :  { %v899_v43 = vadd.f32 %v897_v42, %v889_v41 }
0x154e   :  { %1444 = vtanh.f32 %v899_v43 }
0x1558   :  { %v1445_v49 = vpop.eup %1444 }
0x1559   :  { %902 = vrot.lane.b32.xlu0 %v1445_v49, %s1550_s29 }
0x15cb   :  { %v903_v50 = vpop.permute.xlu0 %902 }
0x15cc   :  { %v905_v51 = vmul.f32 %v1443_v38, %v903_v50 }
0x15ce   :  { %918 = vrot.lane.b32.xlu1 %v905_v51, %s1544_s1 }
0x1640   :  { %v919_v52 = vpop.permute.xlu1 %918 }
0x1641   :  { %1266 = vmatmul.mubr.msk.f32.vlgmr.msra.gmra.mrb[8].mxu0 %vm72_vm1, %v919_v52 }
0x1714   :  { %v988_v54 = vpop.f32.mrb[8].mxu0 }
0x1715   :  { %v989_v55 = vadd.f32 %v1026_v53, %v988_v54  ;;  %v1267_v0 = vpop.f32.mrb[9].mxu0 }
0x1717   :  { %992 = vst [vmem:[#allocation8] sm:$0x3] %v989_v55 }
0x1718   :  { %1523 = shalt.err (!%p1520_p0)
}
0x1719   :  { %s1524_s14 = scalar_lea.hbm %s1800_s5, 32 }
0x171a   :  { %p1525_p1 = scmp.ne.s32.totalorder %s1800_s5, %s1524_s14  ;;  %p1528_p2 = scmp.lt.u32.totalorder %s1524_s14, %s1800_s5 }
0x171c   :  { %p1530_p3 = pnand %p1528_p2, %p1525_p1 }
0x171e   :  { %1533 = shalt.err (!%p1530_p3)
}
0x171f   :  { %1002 = dma.vmem_to_hbm [thread:$0]  %s1000_s10, 32, %s1800_s5, [#allocation4]  }
0x1720   :  { %1538 = dma.done.wait [#allocation4], 32  }
0x1721   :  { %1539 = vsyncadd [#allocation4], 4294967264 }
0x1722   :  { %1006 = vsyncpa [#allocation3], 1 }
0x1723   :  { %1007 = vsyncpa [#allocation6], 1 }
0x1724   :  { %1008 = vsyncpa [#allocation4], 1 }

</bundles_post_ra>
